<compile_context>
chip_gen: v5e
topology: v5e:2x2
jax: 0.10.0
libtpu: 0.0.40
codegen_flags: <defaults>
</compile_context>

<pallas_src>
import functools
import math

import jax
import jax.numpy as jnp
from jax.experimental import pallas as pl
from jax.experimental.pallas import tpu as pltpu


def _round_up(n: int, m: int) -> int:
    return ((n + m - 1) // m) * m


def _cond_aug_kernel(x_ref, w_ref, b_ref, z_ref, cond_ref, mu_ref, ls_ref,
                     *, compute_dtype):
    """Linear + ReLU, split into (mu, log_sigma), build condition in place."""
    h = jnp.dot(
        x_ref[...].astype(compute_dtype),
        w_ref[...].astype(compute_dtype),
        preferred_element_type=jnp.float32,
    )
    h = jnp.maximum(h + b_ref[...], 0.0)           # b_ref (1, emb) broadcasts over rows

    half = mu_ref.shape[1]
    mu = h[:, :half]
    ls = h[:, half:]

    mu_ref[...] = mu.astype(mu_ref.dtype)
    ls_ref[...] = ls.astype(ls_ref.dtype)
    # Sliced, lane-aligned stores (half is a multiple of 128 in practice):
    cond_ref[:, :half] = mu.astype(cond_ref.dtype)
    cond_ref[:, half:] = (jnp.exp(ls) * z_ref[...]).astype(cond_ref.dtype)


def conditioning_augmention(x, w, b, z=None, *, key=None, block_b=128,
                            compute_dtype=jnp.float32):
    """ConditioningAugmention forward.

    Args:
      x: (B, input_dim) text embedding.
      w: (input_dim, emb_dim) linear weight (transposed vs. nn.Linear storage).
      b: (emb_dim,) bias.
      z: optional (B, emb_dim//2) standard-normal noise. If None, drawn with
         jax.random.normal(key, ...) (torch.randn equivalent).
      key: PRNG key used when z is None.
      block_b: batch tile size (rows per grid step).
      compute_dtype: dtype fed to the MXU (f32, or bf16 on v6e/v7x for the
         fast path); accumulation/epilogue always f32.

    Returns: (condition (B, emb_dim), mu (B, emb_dim//2), log_sigma (B, emb_dim//2))
    """
    B, input_dim = x.shape
    emb_dim = w.shape[1]
    assert emb_dim % 2 == 0
    half = emb_dim // 2

    if z is None:
        if key is None:
            key = jax.random.PRNGKey(0)
        z = jax.random.normal(key, (B, half), jnp.float32)
    assert z.shape == (B, half)

    # Sublane-friendly batch tile; pad B up to a multiple of it so every
    # vld/vst is full-width.
    tm = min(block_b, _round_up(max(B, 8), 8))
    Bp = _round_up(B, tm)
    if Bp != B:
        x = jnp.pad(x, ((0, Bp - B), (0, 0)))
        z = jnp.pad(z, ((0, Bp - B), (0, 0)))
    n_blocks = Bp // tm

    b2d = b.reshape(1, emb_dim)

    out_shapes = (
        jax.ShapeDtypeStruct((Bp, emb_dim), jnp.float32),   # condition
        jax.ShapeDtypeStruct((Bp, half), jnp.float32),      # mu
        jax.ShapeDtypeStruct((Bp, half), jnp.float32),      # log_sigma
    )

    itemsize = 4
    cost = pl.CostEstimate(
        flops=2 * Bp * input_dim * emb_dim,
        transcendentals=Bp * half,
        bytes_accessed=itemsize * (
            Bp * input_dim + input_dim * emb_dim + emb_dim
            + Bp * half + Bp * emb_dim + 2 * Bp * half
        ),
    )

    grid_spec = pltpu.PrefetchScalarGridSpec(
        num_scalar_prefetch=0,
        grid=(n_blocks,),
        in_specs=[
            pl.BlockSpec((tm, input_dim), lambda i: (i, 0)),       # x (tiled over B)
            pl.BlockSpec((input_dim, emb_dim), lambda i: (0, 0)),  # w (VMEM-resident)
            pl.BlockSpec((1, emb_dim), lambda i: (0, 0)),          # b (VMEM-resident)
            pl.BlockSpec((tm, half), lambda i: (i, 0)),            # z (tiled over B)
        ],
        out_specs=(
            pl.BlockSpec((tm, emb_dim), lambda i: (i, 0)),         # condition
            pl.BlockSpec((tm, half), lambda i: (i, 0)),            # mu
            pl.BlockSpec((tm, half), lambda i: (i, 0)),            # log_sigma
        ),
    )
    kernel = functools.partial(_cond_aug_kernel, compute_dtype=compute_dtype)

    cond, mu, ls = pl.pallas_call(
        kernel,
        out_shape=out_shapes,
        grid_spec=grid_spec,
        compiler_params=pltpu.CompilerParams(dimension_semantics=("parallel",)),
        cost_estimate=cost,
    )(x, w, b2d, z)

    if Bp != B:
        cond, mu, ls = cond[:B], mu[:B], ls[:B]
    return cond, mu, ls


# ---------------------------------------------------------------------------
# Pure-JAX references
# ---------------------------------------------------------------------------

def _reference(x, w, b, z):
    h = jnp.maximum(x @ w + b[None, :], 0.0)
    half = w.shape[1] // 2
    mu = h[:, :half]
    ls = h[:, half:]
    cond = jnp.concatenate([mu, jnp.exp(ls) * z], axis=1)
    return cond, mu, ls


def _reference_bf16(x, w, b, z):
    h = jnp.dot(x.astype(jnp.bfloat16), w.astype(jnp.bfloat16),
                preferred_element_type=jnp.float32)
    h = jnp.maximum(h + b[None, :], 0.0)
    half = w.shape[1] // 2
    mu = h[:, :half]
    ls = h[:, half:]
    cond = jnp.concatenate([mu, jnp.exp(ls) * z], axis=1)
    return cond, mu, ls


if __name__ == "__main__":
    # Small, TPU-lane-friendly shapes: batch=8, input_dim=128, emb_dim=256.
    B, INPUT_DIM, EMB_DIM = 8, 128, 256
    HALF = EMB_DIM // 2

    key = jax.random.PRNGKey(0)
    kx, kw, kb, kz, kx2, kz2, knoise = jax.random.split(key, 7)

    # Deterministic parameter init (nn.Linear-style uniform bounds).
    bound = 1.0 / math.sqrt(INPUT_DIM)
    w = jax.random.uniform(kw, (INPUT_DIM, EMB_DIM), jnp.float32, -bound, bound)
    b = jax.random.uniform(kb, (EMB_DIM,), jnp.float32, -bound, bound)
    x = jax.random.normal(kx, (B, INPUT_DIM), jnp.float32)
    z = jax.random.normal(kz, (B, HALF), jnp.float32)

    # 1) Explicit z: exact check against the pure-JAX reference.
    cond, mu, ls = conditioning_augmention(x, w, b, z=z)
    jax.block_until_ready((cond, mu, ls))
    cond_r, mu_r, ls_r = _reference(x, w, b, z)
    assert cond.shape == (B, EMB_DIM) and mu.shape == (B, HALF) and ls.shape == (B, HALF)
    assert jnp.allclose(cond, cond_r, atol=1e-5, rtol=1e-5)
    assert jnp.allclose(mu, mu_r, atol=1e-5, rtol=1e-5)
    assert jnp.allclose(ls, ls_r, atol=1e-5, rtol=1e-5)

    # 2) Wrapper-drawn z ~ N(0, 1) (torch.randn equivalent): deterministic
    #    pieces must still match, condition must be finite and start with mu.
    cond2, mu2, ls2 = conditioning_augmention(x, w, b, z=None, key=knoise)
    jax.block_until_ready((cond2, mu2, ls2))
    assert jnp.allclose(mu2, mu_r, atol=1e-5, rtol=1e-5)
    assert jnp.allclose(ls2, ls_r, atol=1e-5, rtol=1e-5)
    assert bool(jnp.all(cond2[:, :HALF] == mu2))
    assert bool(jnp.all(jnp.isfinite(cond2)))

    # 3) Multi-block batch grid with padding (B not a multiple of the tile).
    B3 = 200
    x3 = jax.random.normal(kx2, (B3, INPUT_DIM), jnp.float32)
    z3 = jax.random.normal(kz2, (B3, HALF), jnp.float32)
    cond3, mu3, ls3 = conditioning_augmention(x3, w, b, z=z3, block_b=128)
    jax.block_until_ready((cond3, mu3, ls3))
    cond3_r, mu3_r, ls3_r = _reference(x3, w, b, z3)
    assert cond3.shape == (B3, EMB_DIM)
    assert jnp.allclose(cond3, cond3_r, atol=1e-5, rtol=1e-5)
    assert jnp.allclose(mu3, mu3_r, atol=1e-5, rtol=1e-5)
    assert jnp.allclose(ls3, ls3_r, atol=1e-5, rtol=1e-5)

    # 4) bf16 MXU fast path (v6e/v7x), f32 accumulation + f32 epilogue.
    cond4, mu4, ls4 = conditioning_augmention(x, w, b, z=z, compute_dtype=jnp.bfloat16)
    jax.block_until_ready((cond4, mu4, ls4))
    cond4_r, mu4_r, ls4_r = _reference_bf16(x, w, b, z)
    assert jnp.allclose(mu4, mu4_r, atol=1e-2, rtol=1e-2)
    assert jnp.allclose(ls4, ls4_r, atol=1e-2, rtol=1e-2)
    assert jnp.allclose(cond4, cond4_r, atol=2e-2, rtol=2e-2)

    print("KERNEL_OK")
</pallas_src>

<mosaic_0001>
module attributes {stable_mosaic.version = 11 : i64} {
  func.func @_cond_aug_kernel(%arg0: i32, %arg1: memref<8x128xf32, #tpu.memory_space<vmem>>, %arg2: memref<128x256xf32, #tpu.memory_space<vmem>>, %arg3: memref<1x256xf32, #tpu.memory_space<vmem>>, %arg4: memref<8x128xf32, #tpu.memory_space<vmem>>, %arg5: memref<8x256xf32, #tpu.memory_space<vmem>>, %arg6: memref<8x128xf32, #tpu.memory_space<vmem>>, %arg7: memref<8x128xf32, #tpu.memory_space<vmem>>) attributes {dimension_semantics = [#tpu.dimension_semantics<parallel>], iteration_bounds = array<i64: 1>, scalar_prefetch = 0 : i64, scratch_operands = 0 : i64, tpu.core_type = #tpu.core_type<tc>, window_params = [{transform_indices = @transform_0, window_bounds = array<i64: 8, 128>}, {pipeline_mode = #tpu.pipeline_mode<synchronous>, transform_indices = @transform_1, window_bounds = array<i64: 128, 256>}, {pipeline_mode = #tpu.pipeline_mode<synchronous>, transform_indices = @transform_2, window_bounds = array<i64: 1, 256>}, {transform_indices = @transform_3, window_bounds = array<i64: 8, 128>}, {transform_indices = @transform_4, window_bounds = array<i64: 8, 256>}, {transform_indices = @transform_5, window_bounds = array<i64: 8, 128>}, {transform_indices = @transform_6, window_bounds = array<i64: 8, 128>}]} {
    %c0 = arith.constant 0 : index
    %c0_0 = arith.constant 0 : index
    %0 = vector.load %arg1[%c0, %c0_0] : memref<8x128xf32, #tpu.memory_space<vmem>>, vector<8x128xf32>
    %c0_1 = arith.constant 0 : index
    %c0_2 = arith.constant 0 : index
    %1 = vector.load %arg2[%c0_1, %c0_2] : memref<128x256xf32, #tpu.memory_space<vmem>>, vector<128x256xf32>
    %cst = arith.constant dense<0.000000e+00> : vector<8x256xf32>
    %2 = tpu.matmul %0, %1, %cst {dimension_numbers = #tpu.dot_dimension_numbers<[1], [0], [0], [1], [0, 0, 1, 1], [], []>} : vector<8x128xf32>, vector<128x256xf32>, vector<8x256xf32> -> vector<8x256xf32>
    %c0_3 = arith.constant 0 : index
    %c0_4 = arith.constant 0 : index
    %3 = vector.load %arg3[%c0_3, %c0_4] : memref<1x256xf32, #tpu.memory_space<vmem>>, vector<1x256xf32>
    %4 = vector.broadcast %3 : vector<1x256xf32> to vector<8x256xf32>
    %5 = arith.addf %2, %4 : vector<8x256xf32>
    %cst_5 = arith.constant 0.000000e+00 : f32
    %6 = vector.broadcast %cst_5 : f32 to vector<8x256xf32>
    %7 = arith.maximumf %5, %6 : vector<8x256xf32>
    %8 = vector.extract_strided_slice %7 {offsets = [0, 0], sizes = [8, 128], strides = [1, 1]} : vector<8x256xf32> to vector<8x128xf32>
    %9 = vector.extract_strided_slice %7 {offsets = [0, 128], sizes = [8, 128], strides = [1, 1]} : vector<8x256xf32> to vector<8x128xf32>
    %c0_6 = arith.constant 0 : index
    %c0_7 = arith.constant 0 : index
    %10 = vector.load %arg6[%c0_6, %c0_7] : memref<8x128xf32, #tpu.memory_space<vmem>>, vector<8x128xf32>
    tpu.vector_store %arg6[%c0_6, %c0_7], %8 {strides = array<i32>} : memref<8x128xf32, #tpu.memory_space<vmem>>, vector<8x128xf32>,
    %c0_8 = arith.constant 0 : index
    %c0_9 = arith.constant 0 : index
    %11 = vector.load %arg7[%c0_8, %c0_9] : memref<8x128xf32, #tpu.memory_space<vmem>>, vector<8x128xf32>
    tpu.vector_store %arg7[%c0_8, %c0_9], %9 {strides = array<i32>} : memref<8x128xf32, #tpu.memory_space<vmem>>, vector<8x128xf32>,
    %c0_10 = arith.constant 0 : index
    %c0_11 = arith.constant 0 : index
    %12 = vector.load %arg5[%c0_10, %c0_11] : memref<8x256xf32, #tpu.memory_space<vmem>>, vector<8x128xf32>
    tpu.vector_store %arg5[%c0_10, %c0_11], %8 {strides = array<i32>} : memref<8x256xf32, #tpu.memory_space<vmem>>, vector<8x128xf32>,
    %13 = math.exp %9 : vector<8x128xf32>
    %c0_12 = arith.constant 0 : index
    %c0_13 = arith.constant 0 : index
    %14 = vector.load %arg4[%c0_12, %c0_13] : memref<8x128xf32, #tpu.memory_space<vmem>>, vector<8x128xf32>
    %15 = arith.mulf %13, %14 : vector<8x128xf32>
    %c0_14 = arith.constant 0 : index
    %c128 = arith.constant 128 : index
    %16 = vector.load %arg5[%c0_14, %c128] : memref<8x256xf32, #tpu.memory_space<vmem>>, vector<8x128xf32>
    tpu.vector_store %arg5[%c0_14, %c128], %15 {strides = array<i32>} : memref<8x256xf32, #tpu.memory_space<vmem>>, vector<8x128xf32>,
    return
  }
  func.func @transform_0(%arg0: i32) -> (i32, i32) {
    %c0_i32 = arith.constant 0 : i32
    %c0_i32_0 = arith.constant 0 : i32
    return %arg0, %c0_i32 : i32, i32
  }
  func.func @transform_1(%arg0: i32) -> (i32, i32) {
    %c0_i32 = arith.constant 0 : i32
    %c0_i32_0 = arith.constant 0 : i32
    %c0_i32_1 = arith.constant 0 : i32
    return %c0_i32, %c0_i32_0 : i32, i32
  }
  func.func @transform_2(%arg0: i32) -> (i32, i32) {
    %c0_i32 = arith.constant 0 : i32
    %c0_i32_0 = arith.constant 0 : i32
    %c0_i32_1 = arith.constant 0 : i32
    return %c0_i32, %c0_i32_0 : i32, i32
  }
  func.func @transform_3(%arg0: i32) -> (i32, i32) {
    %c0_i32 = arith.constant 0 : i32
    %c0_i32_0 = arith.constant 0 : i32
    return %arg0, %c0_i32 : i32, i32
  }
  func.func @transform_4(%arg0: i32) -> (i32, i32) {
    %c0_i32 = arith.constant 0 : i32
    %c0_i32_0 = arith.constant 0 : i32
    return %arg0, %c0_i32 : i32, i32
  }
  func.func @transform_5(%arg0: i32) -> (i32, i32) {
    %c0_i32 = arith.constant 0 : i32
    %c0_i32_0 = arith.constant 0 : i32
    return %arg0, %c0_i32 : i32, i32
  }
  func.func @transform_6(%arg0: i32) -> (i32, i32) {
    %c0_i32 = arith.constant 0 : i32
    %c0_i32_0 = arith.constant 0 : i32
    return %arg0, %c0_i32 : i32, i32
  }
}

</mosaic_0001>

<bundles_post_ra>
// kernel: tpu_custom_call.1
= control target key start
LH: loop header
LB: loop body
LE: loop exit
PB: predicated region body
PF: predicated region fallthrough
CT: control target
= control target key end

     0   :  { %12 = vsyncpa [#allocation3], 0  ;;  %s472_s0 = inlined_call_operand.hbm [shape: f32[8,128], index: 0, kind: input, shape index: {}]   ;;  %s473_s1 = inlined_call_operand.hbm [shape: f32[128,256], index: 1, kind: input, shape index: {}]   ;;  %s474_s2 = inlined_call_operand.hbm [shape: f32[1,256], index: 2, kind: input, shape index: {}]   ;;  %s475_s3 = inlined_call_operand.hbm [shape: f32[8,128], index: 3, kind: input, shape index: {}]   ;;  %s476_s4 = inlined_call_operand.hbm [shape: f32[8,256], index: 4, kind: output, shape index: {0}]   ;;  %s477_s5 = inlined_call_operand.hbm [shape: f32[8,128], index: 5, kind: output, shape index: {1}]   ;;  %s478_s6 = inlined_call_operand.hbm [shape: f32[8,128], index: 6, kind: output, shape index: {2}]  }
   0x1   :  { %13 = vsyncpa [#allocation6], 0 }
   0x2   :  { %14 = vsyncpa [#allocation9], 0 }
   0x3   :  { %15 = vsyncpa [#allocation4], 0  ;;  %s32_s23 = sshll.u32 %s473_s1, 4  ;;  %s33_s23 = int_to_ptr.hbm [resolvable:$true] %s32_s23 }
   0x4   :  { %16 = vsyncpa [#allocation12], 0  ;;  %s407_s24 = smov [#allocation5]   ;;  %s22_s28 = sshll.u32 %s472_s0, 4  ;;  %s23_s28 = int_to_ptr.hbm [resolvable:$true] %s22_s28 }
   0x5   :  { %s34_s25 = sshll.u32 %s407_s24, 4  ;;  %s408_s29 = smov 256   ;;  %s35_s25 = int_to_ptr.vmem [resolvable:$true] %s34_s25 }
   0x6   :  { %s409_s30 = smov 16   ;;  %s410_s7 = smov [#allocation2]  }
   0x7   :  { %40 = dma.hbm_to_vmem [thread:$0]  %s33_s23, 4096, %s35_s25, [#allocation6], %s408_s29, %s408_s29, %s409_s30  }
   0x8   :  { %s24_s8 = sshll.u32 %s410_s7, 4  ;;  %s46_s11 = sshll.u32 %s474_s2, 4  ;;  %s25_s8 = int_to_ptr.vmem [resolvable:$true] %s24_s8  ;;  %s47_s11 = int_to_ptr.hbm [resolvable:$true] %s46_s11 }
   0x9   :  { %27 = dma.hbm_to_vmem [thread:$0]  %s23_s28, 128, %s25_s8, [#allocation3]  }
   0xa   :  { %s57_s13 = sshll.u32 %s475_s3, 4  ;;  %s411_s14 = smov [#allocation7]   ;;  %s58_s13 = int_to_ptr.hbm [resolvable:$true] %s57_s13 }
   0xb   :  { %s48_s15 = sshll.u32 %s411_s14, 4  ;;  %s412_s0 = smov [#allocation8]   ;;  %s49_s15 = int_to_ptr.vmem [resolvable:$true] %s48_s15 }
   0xc   :  { %51 = dma.hbm_to_vmem [thread:$0]  %s47_s11, 32, %s49_s15, [#allocation6]  }
   0xd   :  { %s59_s16 = sshll.u32 %s412_s0, 4  ;;  %s60_s16 = int_to_ptr.vmem [resolvable:$true] %s59_s16 }
   0xe   :  { %62 = dma.hbm_to_vmem [thread:$0]  %s58_s13, 128, %s60_s16, [#allocation9]  }
   0xf   :  { %397 = dma.done.wait [#allocation3], 128  }
  0x10   :  { %398 = vsyncadd [#allocation3], 4294967168 }
  0x11   :  { %399 = dma.done.wait [#allocation6], 4128  }
  0x12   :  { %400 = vsyncadd [#allocation6], 4294963168 }
  0x13   :  { %401 = dma.done.wait [#allocation9], 128  }
  0x14   :  { %402 = vsyncadd [#allocation9], 4294967168  ;;  %v111_v0 = vld [vmem:[#allocation5 + $0xf8] sm:$0xff]  ;;  %v109_v1 = vld [vmem:[#allocation5 + $0xe8] sm:$0xff]  ;;  %s413_s2 = smov [#allocation11]   ;;  %s186_s19 = sshll.u32 %s477_s5, 4  ;;  %s187_s19 = int_to_ptr.hbm [resolvable:$true] %s186_s19 }
  0x15   :  { %138 = vmatpush.msra.mxu1 %v111_v0  ;;  %v110_v2 = vld [vmem:[#allocation5 + $0xf0] sm:$0xff]  ;;  %v107_v3 = vld [vmem:[#allocation5 + $0xd8] sm:$0xff]  ;;  %v108_v4 = vld [vmem:[#allocation5 + $0xe0] sm:$0xff]  ;;  %s184_s3 = sshll.u32 %s413_s2, 4  ;;  %s414_s20 = smov [#allocation13]   ;;  %s185_s3 = int_to_ptr.vmem [resolvable:$true] %s184_s3 }
  0x16   :  { %118 = vmatpush.msra.mxu0 %v110_v2  ;;  %v106_v5 = vld [vmem:[#allocation5 + $0xd0] sm:$0xff]  ;;  %v105_v6 = vld [vmem:[#allocation5 + $0xc8] sm:$0xff]  ;;  %v104_v7 = vld [vmem:[#allocation5 + $0xc0] sm:$0xff]  ;;  %s195_s21 = sshll.u32 %s414_s20, 4  ;;  %s197_s24 = sshll.u32 %s478_s6, 4  ;;  %s196_s21 = int_to_ptr.vmem [resolvable:$true] %s195_s21  ;;  %s198_s24 = int_to_ptr.hbm [resolvable:$true] %s197_s24 }
  0x17   :  { %139 = vmatpush.msra.mxu1 %v109_v1  ;;  %v103_v8 = vld [vmem:[#allocation5 + $0xb8] sm:$0xff]  ;;  %v102_v9 = vld [vmem:[#allocation5 + $0xb0] sm:$0xff]  ;;  %v101_v10 = vld [vmem:[#allocation5 + $0xa8] sm:$0xff]  ;;  %s415_s5 = smov [#allocation10]   ;;  %s175_s6 = sshll.u32 %s476_s4, 4  ;;  %s176_s6 = int_to_ptr.hbm [resolvable:$true] %s175_s6 }
  0x18   :  { %119 = vmatpush.msra.mxu0 %v108_v4  ;;  %v100_v11 = vld [vmem:[#allocation5 + $0xa0] sm:$0xff]  ;;  %v99_v12 = vld [vmem:[#allocation5 + $0x98] sm:$0xff]  ;;  %v98_v13 = vld [vmem:[#allocation5 + $0x90] sm:$0xff]  ;;  %s173_s25 = sshll.u32 %s415_s5, 4  ;;  %s174_s25 = int_to_ptr.vmem [resolvable:$true] %s173_s25 }
  0x19   :  { %140 = vmatpush.msra.mxu1 %v107_v3  ;;  %v97_v14 = vld [vmem:[#allocation5 + $0x88] sm:$0xff]  ;;  %v96_v15 = vld [vmem:[#allocation5 + $0x80] sm:$0xff]  ;;  %v95_v16 = vld [vmem:[#allocation5 + $0x78] sm:$0xff] }
  0x1a   :  { %120 = vmatpush.msra.mxu0 %v106_v5  ;;  %v94_v17 = vld [vmem:[#allocation5 + $0x70] sm:$0xff]  ;;  %v93_v18 = vld [vmem:[#allocation5 + $0x68] sm:$0xff]  ;;  %v92_v19 = vld [vmem:[#allocation5 + $0x60] sm:$0xff] }
  0x1b   :  { %141 = vmatpush.msra.mxu1 %v105_v6  ;;  %v91_v20 = vld [vmem:[#allocation5 + $0x58] sm:$0xff]  ;;  %v90_v21 = vld [vmem:[#allocation5 + $0x50] sm:$0xff]  ;;  %v89_v22 = vld [vmem:[#allocation5 + $0x48] sm:$0xff] }
  0x1c   :  { %121 = vmatpush.msra.mxu0 %v104_v7  ;;  %v88_v23 = vld [vmem:[#allocation5 + $0x40] sm:$0xff]  ;;  %v87_v24 = vld [vmem:[#allocation5 + $0x38] sm:$0xff]  ;;  %v86_v25 = vld [vmem:[#allocation5 + $0x30] sm:$0xff] }
  0x1d   :  { %142 = vmatpush.msra.mxu1 %v103_v8  ;;  %v85_v26 = vld [vmem:[#allocation5 + $0x28] sm:$0xff]  ;;  %v84_v27 = vld [vmem:[#allocation5 + $0x20] sm:$0xff]  ;;  %v83_v28 = vld [vmem:[#allocation5 + $0x18] sm:$0xff] }
  0x1e   :  { %122 = vmatpush.msra.mxu0 %v102_v9  ;;  %v82_v29 = vld [vmem:[#allocation5 + $0x10] sm:$0xff]  ;;  %v81_v30 = vld [vmem:[#allocation5 + $0x8] sm:$0xff]  ;;  %v79_v31 = vld [vmem:[#allocation2] sm:$0xff] }
  0x1f   :  { %143 = vmatpush.msra.mxu1 %v101_v10  ;;  %v80_v32 = vld [vmem:[#allocation5] sm:$0xff] }
  0x20   :  { %123 = vmatpush.msra.mxu0 %v100_v11  ;;  %v112_v33 = vld [vmem:[#allocation7] sm:$0x3]  ;;  %v165_v43 = vld [vmem:[#allocation8] sm:$0xff] }
  0x21   :  { %144 = vmatpush.msra.mxu1 %v99_v12  ;;  %v115_v34 = vperm.slane %v112_v33, 1  ;;  %v114_v35 = vperm.slane %v112_v33, 0 }
  0x22   :  { %124 = vmatpush.msra.mxu0 %v98_v13 }
  0x23   :  { %145 = vmatpush.msra.mxu1 %v97_v14 }
  0x24   :  { %125 = vmatpush.msra.mxu0 %v96_v15 }
  0x25   :  { %146 = vmatpush.msra.mxu1 %v95_v16 }
  0x26   :  { %126 = vmatpush.msra.mxu0 %v94_v17 }
  0x27   :  { %147 = vmatpush.msra.mxu1 %v93_v18 }
  0x28   :  { %127 = vmatpush.msra.mxu0 %v92_v19 }
  0x29   :  { %148 = vmatpush.msra.mxu1 %v91_v20 }
  0x2a   :  { %128 = vmatpush.msra.mxu0 %v90_v21 }
  0x2b   :  { %149 = vmatpush.msra.mxu1 %v89_v22 }
  0x2c   :  { %129 = vmatpush.msra.mxu0 %v88_v23 }
  0x2d   :  { %150 = vmatpush.msra.mxu1 %v87_v24 }
  0x2e   :  { %130 = vmatpush.msra.mxu0 %v86_v25 }
  0x2f   :  { %151 = vmatpush.msra.mxu1 %v85_v26 }
  0x30   :  { %131 = vmatpush.msra.mxu0 %v84_v27 }
  0x31   :  { %152 = vmatpush.msra.mxu1 %v83_v28 }
  0x32   :  { %132 = vmatpush.msra.mxu0 %v82_v29 }
  0x33   :  { %153 = vmatpush.msra.mxu1 %v81_v30 }
  0x34   :  { %154 = vmatmul.f32.vlgmr.msra.gmra.mxu1 %v79_v31  ;;  %133 = vmatpush.msra.mxu0 %v80_v32 }
  0x35   :  { %134 = vmatmul.f32.vlgmr.msra.gmra.mxu0 %v79_v31 }
  0xb1   :  { %v155_v36 = vpop.f32.mrf.mxu1 }
  0xb2   :  { %v156_v37 = vadd.f32 %v155_v36, %v115_v34  ;;  %v135_v38 = vpop.f32.mrf.mxu0 }
  0xb3   :  { %v136_v39 = vadd.f32 %v135_v38, %v114_v35 }
  0xb4   :  { %v159_v40 = vmax.f32 %v156_v37, 0.0 }
  0xb5   :  { %v158_v41 = vmax.f32 %v136_v39, 0.0 }
  0xb6   :  { %161 = vst [vmem:[#allocation13] sm:$0xff] %v159_v40  ;;  %v163_v42 = vmul.f32 1.442695, %v159_v40 }
  0xb7   :  { %160 = vst [vmem:[#allocation11] sm:$0xff] %v158_v41 }
  0xb8   :  { %227 = vpow2.f32 %v163_v42  ;;  %162 = vst [vmem:[#allocation10] sm:$0xff] %v158_v41  ;;  %189 = dma.vmem_to_hbm [thread:$0]  %s185_s3, 128, %s187_s19, [#allocation12]  }
  0xb9   :  { %200 = dma.vmem_to_hbm [thread:$0]  %s196_s21, 128, %s198_s24, [#allocation12]  }
  0xbe   :  { %v228_v44 = vpop.eup %227 }
  0xbf   :  { %v166_v45 = vmul.f32 %v228_v44, %v165_v43 }
  0xc1   :  { %167 = vst [vmem:[#allocation10 + $0x8] sm:$0xff] %v166_v45 }
  0xc2   :  { %178 = dma.vmem_to_hbm [thread:$0]  %s174_s25, 256, %s176_s6, [#allocation4]  }
  0xc3   :  { %403 = dma.done.wait [#allocation4], 256  }
  0xc4   :  { %404 = vsyncadd [#allocation4], 4294967040 }
  0xc5   :  { %405 = dma.done.wait [#allocation12], 256  }
  0xc6   :  { %406 = vsyncadd [#allocation12], 4294967040 }
  0xc7   :  { %213 = vsyncpa [#allocation3], 1 }
  0xc8   :  { %214 = vsyncpa [#allocation6], 1 }
  0xc9   :  { %215 = vsyncpa [#allocation9], 1 }
  0xca   :  { %216 = vsyncpa [#allocation4], 1 }
  0xcb   :  { %217 = vsyncpa [#allocation12], 1 }

</bundles_post_ra>
